<compile_context>
chip_gen: v7x
topology: tpu7x:2x2x1
jax: 0.10.0
libtpu: 0.0.40
codegen_flags: <defaults>
</compile_context>

<pallas_src>
import jax
import jax.numpy as jnp
from jax import lax
from jax.experimental import pallas as pl
from jax.experimental.pallas import tpu as pltpu

BB = 8  # batch tile per program: keeps per-step slices sublane-aligned (8 rows)


def lstm_kernel(x_ref, wih_ref, whh_ref, b_ref, h_out_ref, gx_ref):
    TB, G = gx_ref.shape           # (T*BB, 4H)
    BBk, H = h_out_ref.shape       # (BB, H)
    T = TB // BBk

    # ---- Phase 1 (time-parallel): input projection for ALL timesteps of this
    # batch tile in one f32 MXU matmul, with both biases (pre-summed, g-scaled)
    # folded in.  (T*BB, D) @ (D, 4H) -> (T*BB, 4H).
    gx_ref[...] = (jnp.dot(x_ref[...], wih_ref[...],
                           preferred_element_type=jnp.float32)
                   + b_ref[...])

    # Lane mask selecting the cell-candidate (g) gate columns [2H, 3H).
    lane = lax.broadcasted_iota(jnp.int32, (BBk, G), 1)
    is_g = (lane >= 2 * H) & (lane < 3 * H)

    # Loop-invariant bf16 recurrent weights, hoisted out of the loop.
    # TODO(synk): could pin W_hh in the MXU across all T steps via
    # pltpu.matmul_push_rhs / matmul_acc_lhs / matmul_pop; kept as jnp.dot for
    # robustness (loop is fully unrolled, so the weight stays vreg-resident).
    whh = whh_ref[...]             # (H, 4H) bf16

    # ---- Phase 2 (serial recurrence), h/c carried as values (stay in vregs).
    def step(t, carry):
        h, c = carry
        row = pl.multiple_of(t * BBk, BBk)      # BB=8 -> sublane-aligned slice
        # Single native bf16 MXU pass on the critical path (f32 accumulate).
        gates = gx_ref[pl.ds(row, BBk), :] + jnp.dot(
            h.astype(jnp.bfloat16), whh, preferred_element_type=jnp.float32)
        # ONE full-vreg EUP pass (sigmoid); g block derived on the VPU as
        # tanh(z) = 2*sigmoid(2z) - 1 (the *2 is pre-folded into the weights).
        s = jax.nn.sigmoid(gates)
        acts = jnp.where(is_g, 2.0 * s - 1.0, s)
        i_g = acts[:, 0:H]
        f_g = acts[:, H:2 * H]
        g_g = acts[:, 2 * H:3 * H]
        o_g = acts[:, 3 * H:4 * H]
        c_new = f_g * c + i_g * g_g
        h_new = o_g * jnp.tanh(c_new)
        return h_new, c_new

    h0 = jnp.zeros((BBk, H), jnp.float32)
    c0 = jnp.zeros((BBk, H), jnp.float32)
    # unroll=True is right for small fixed T (<=16); use partial unroll if T grows.
    h_last, _ = lax.fori_loop(0, T, step, (h0, c0), unroll=True)
    h_out_ref[...] = h_last


def prepare_lstm_params(w_ih, w_hh, b_ih, b_hh, w_lin, b_lin):
    """One-time parameter prep (hoisted out of the per-call forward).

    Folds the *2 pre-scale of the g-gate columns (for tanh(z)=2*sigmoid(2z)-1)
    into the transposed weights and the summed bias, and pre-converts the
    recurrent weights to bf16 for a single-pass MXU matmul.
    """
    H = w_hh.shape[1]
    G = 4 * H
    gscale = jnp.concatenate([
        jnp.ones((2 * H,), jnp.float32),
        jnp.full((H,), 2.0, jnp.float32),      # g columns scaled by 2
        jnp.ones((H,), jnp.float32),
    ])
    wih_t = jnp.transpose(w_ih) * gscale[None, :]                        # (D, 4H) f32
    whh_t = (jnp.transpose(w_hh) * gscale[None, :]).astype(jnp.bfloat16)  # (H, 4H) bf16
    bias = ((b_ih + b_hh) * gscale).reshape(1, G).astype(jnp.float32)    # (1, 4H)
    w_lin_t = jnp.transpose(w_lin)                                        # (H, O)
    return wih_t, whh_t, bias, w_lin_t, b_lin


@jax.jit
def lstm_model_forward(x_btd, wih_t, whh_t, bias, w_lin_t, b_lin):
    """x_btd: (B, T, D_in) float32, PyTorch batch_first layout. Returns (B, O)."""
    B, T, D = x_btd.shape
    H, G = whh_t.shape
    assert G == 4 * H
    # Alignment contract of the full-vreg gate trick / sublane-aligned slices.
    assert B % BB == 0, "batch must be a multiple of 8 (sublane alignment)"
    assert G % 128 == 0, "4*hidden must be a multiple of 128 (full-vreg gates)"
    nb = B // BB

    # VMEM guardrail (whole-sequence-resident gates_x slab; v7x has 64 MiB VMEM).
    vmem_needed = (T * BB * G * 4                                   # gx scratch
                   + 2 * (T * BB * D * 4 + D * G * 4 + H * G * 2   # dbl-buffered ins
                          + G * 4 + BB * H * 4))
    assert vmem_needed < 24 * 1024 * 1024, (
        "sequence/hidden too large for whole-sequence-resident design; chunk T")

    # Rearrange to (num_batch_tiles, T*BB, D): each program gets a contiguous,
    # time-major slab for its 8-row batch tile.  allow_input_fusion lets XLA
    # fuse this rearrangement into the pallas custom-call operand.
    x_g = jnp.transpose(x_btd.reshape(nb, BB, T, D), (0, 2, 1, 3)).reshape(
        nb, T * BB, D)

    h_last = pl.pallas_call(
        lstm_kernel,
        grid=(nb,),
        out_shape=jax.ShapeDtypeStruct((B, H), jnp.float32),
        in_specs=[
            pl.BlockSpec((None, T * BB, D), lambda b: (b, 0, 0)),  # x tile (T*BB, D)
            pl.BlockSpec((D, G), lambda b: (0, 0)),                # W_ih^T (g-scaled)
            pl.BlockSpec((H, G), lambda b: (0, 0)),                # W_hh^T bf16
            pl.BlockSpec((1, G), lambda b: (0, 0)),                # bias
        ],
        out_specs=pl.BlockSpec((BB, H), lambda b: (b, 0)),
        scratch_shapes=[pltpu.VMEM((T * BB, G), jnp.float32)],     # gates_x slab
        compiler_params=pltpu.CompilerParams(
            dimension_semantics=("parallel",),          # batch tiles -> v7x 2nd TC
            vmem_limit_bytes=32 * 1024 * 1024,
            allow_input_fusion=[True, False, False, False],
        ),
    )(x_g, wih_t, whh_t, bias)

    # Final Linear on the last hidden state in plain XLA (inside the jit): an
    # in-kernel (B,H)x(H,1) matmul would force a lane-width-1 masked store.
    return h_last @ w_lin_t + b_lin.reshape(1, -1)


def lstm_model_reference(x_btd, w_ih, w_hh, b_ih, b_hh, w_lin, b_lin):
    """Pure-JAX f32 reference matching torch.nn.LSTM (gate order i,f,g,o) + Linear."""
    B, T, D = x_btd.shape
    H = w_hh.shape[1]

    def step(carry, x_t):
        h, c = carry
        gates = x_t @ w_ih.T + b_ih + h @ w_hh.T + b_hh
        i = jax.nn.sigmoid(gates[:, 0:H])
        f = jax.nn.sigmoid(gates[:, H:2 * H])
        g = jnp.tanh(gates[:, 2 * H:3 * H])
        o = jax.nn.sigmoid(gates[:, 3 * H:4 * H])
        c = f * c + i * g
        h = o * jnp.tanh(c)
        return (h, c), h

    h0 = jnp.zeros((B, H), jnp.float32)
    c0 = jnp.zeros((B, H), jnp.float32)
    (h_last, _), _ = lax.scan(step, (h0, c0), jnp.transpose(x_btd, (1, 0, 2)))
    return h_last @ w_lin.T + b_lin


if __name__ == "__main__":
    # Small shapes consistent with the module's forward; B=8 keeps all per-step
    # slices sublane-aligned and (BB, 4H) = (8, 128) = exactly one vreg.
    B, T, D_in, H, O = 8, 8, 8, 32, 1

    key = jax.random.PRNGKey(0)
    ks = jax.random.split(key, 8)
    bound = 1.0 / jnp.sqrt(jnp.float32(H))

    # Deterministic synthetic parameters (PyTorch nn.LSTM / nn.Linear shapes).
    w_ih = jax.random.uniform(ks[0], (4 * H, D_in), jnp.float32, -bound, bound)
    w_hh = jax.random.uniform(ks[1], (4 * H, H), jnp.float32, -bound, bound)
    b_ih = jax.random.uniform(ks[2], (4 * H,), jnp.float32, -bound, bound)
    b_hh = jax.random.uniform(ks[3], (4 * H,), jnp.float32, -bound, bound)
    w_lin = jax.random.uniform(ks[4], (O, H), jnp.float32, -bound, bound)
    b_lin = jax.random.uniform(ks[5], (O,), jnp.float32, -bound, bound)

    x = jax.random.normal(ks[6], (B, T, D_in), jnp.float32)

    # One-time parameter prep (hoisted out of the forward per perf review).
    params = prepare_lstm_params(w_ih, w_hh, b_ih, b_hh, w_lin, b_lin)

    out = lstm_model_forward(x, *params)
    out = jax.block_until_ready(out)

    ref = lstm_model_reference(x, w_ih, w_hh, b_ih, b_hh, w_lin, b_lin)
    assert out.shape == (B, O)
    # Tolerance loosened for the bf16 recurrent matmul (per perf review).
    assert jnp.allclose(out, ref, atol=5e-2, rtol=5e-2), (out, ref)

    print("KERNEL_OK")
</pallas_src>

<mosaic_0001>
module attributes {stable_mosaic.version = 11 : i64} {
  func.func @lstm_kernel(%arg0: i32, %arg1: memref<1x64x8xf32, #tpu.memory_space<vmem>>, %arg2: memref<8x128xf32, #tpu.memory_space<vmem>>, %arg3: memref<32x128xbf16, #tpu.memory_space<vmem>>, %arg4: memref<1x128xf32, #tpu.memory_space<vmem>>, %arg5: memref<8x32xf32, #tpu.memory_space<vmem>>, %arg6: memref<64x128xf32, #tpu.memory_space<vmem>>) attributes {dimension_semantics = [#tpu.dimension_semantics<parallel>], iteration_bounds = array<i64: 1>, scalar_prefetch = 0 : i64, scratch_operands = 1 : i64, tpu.core_type = #tpu.core_type<tc>, window_params = [{transform_indices = @transform_0, window_bounds = array<i64: 1, 64, 8>}, {pipeline_mode = #tpu.pipeline_mode<synchronous>, transform_indices = @transform_1, window_bounds = array<i64: 8, 128>}, {pipeline_mode = #tpu.pipeline_mode<synchronous>, transform_indices = @transform_2, window_bounds = array<i64: 32, 128>}, {pipeline_mode = #tpu.pipeline_mode<synchronous>, transform_indices = @transform_3, window_bounds = array<i64: 1, 128>}, {transform_indices = @transform_4, window_bounds = array<i64: 8, 32>}]} {
    %c0 = arith.constant 0 : index
    %c0_0 = arith.constant 0 : index
    %c0_1 = arith.constant 0 : index
    %0 = vector.load %arg1[%c0, %c0_0, %c0_1] : memref<1x64x8xf32, #tpu.memory_space<vmem>>, vector<1x64x8xf32>
    %1 = vector.shape_cast %0 : vector<1x64x8xf32> to vector<64x8xf32>
    %c0_2 = arith.constant 0 : index
    %c0_3 = arith.constant 0 : index
    %2 = vector.load %arg2[%c0_2, %c0_3] : memref<8x128xf32, #tpu.memory_space<vmem>>, vector<8x128xf32>
    %cst = arith.constant dense<0.000000e+00> : vector<64x128xf32>
    %3 = tpu.matmul %1, %2, %cst {dimension_numbers = #tpu.dot_dimension_numbers<[1], [0], [0], [1], [0, 0, 1, 1], [], []>} : vector<64x8xf32>, vector<8x128xf32>, vector<64x128xf32> -> vector<64x128xf32>
    %c0_4 = arith.constant 0 : index
    %c0_5 = arith.constant 0 : index
    %4 = vector.load %arg4[%c0_4, %c0_5] : memref<1x128xf32, #tpu.memory_space<vmem>>, vector<1x128xf32>
    %5 = vector.broadcast %4 : vector<1x128xf32> to vector<64x128xf32>
    %6 = arith.addf %3, %5 : vector<64x128xf32>
    %c0_6 = arith.constant 0 : index
    %c0_7 = arith.constant 0 : index
    %7 = vector.load %arg6[%c0_6, %c0_7] : memref<64x128xf32, #tpu.memory_space<vmem>>, vector<64x128xf32>
    tpu.vector_store %arg6[%c0_6, %c0_7], %6 {strides = array<i32>} : memref<64x128xf32, #tpu.memory_space<vmem>>, vector<64x128xf32>,
    %8 = tpu.iota {dimensions = array<i32: 1>} : vector<8x128xi32>
    %c64_i32 = arith.constant 64 : i32
    %9 = vector.broadcast %c64_i32 : i32 to vector<8x128xi32>
    %10 = arith.cmpi sge, %8, %9 : vector<8x128xi32>
    %c96_i32 = arith.constant 96 : i32
    %11 = vector.broadcast %c96_i32 : i32 to vector<8x128xi32>
    %12 = arith.cmpi slt, %8, %11 : vector<8x128xi32>
    %13 = arith.andi %10, %12 : vector<8x128xi1>
    %c0_8 = arith.constant 0 : index
    %c0_9 = arith.constant 0 : index
    %14 = vector.load %arg3[%c0_8, %c0_9] : memref<32x128xbf16, #tpu.memory_space<vmem>>, vector<32x128xbf16>
    %cst_10 = arith.constant 0.000000e+00 : f32
    %15 = vector.broadcast %cst_10 : f32 to vector<8x32xf32>
    %cst_11 = arith.constant 0.000000e+00 : f32
    %16 = vector.broadcast %cst_11 : f32 to vector<8x32xf32>
    %c0_i32 = arith.constant 0 : i32
    %c8_i32 = arith.constant 8 : i32
    %17 = arith.muli %c0_i32, %c8_i32 : i32
    %18 = tpu.assume_multiple %17, 8 : i32
    %19 = arith.index_cast %18 : i32 to index
    %c0_12 = arith.constant 0 : index
    %20 = vector.load %arg6[%19, %c0_12] : memref<64x128xf32, #tpu.memory_space<vmem>>, vector<8x128xf32>
    %21 = arith.truncf %15 : vector<8x32xf32> to vector<8x32xbf16>
    %cst_13 = arith.constant dense<0.000000e+00> : vector<8x128xf32>
    %22 = tpu.matmul %21, %14, %cst_13 {dimension_numbers = #tpu.dot_dimension_numbers<[1], [0], [0], [1], [0, 0, 1, 1], [], []>} : vector<8x32xbf16>, vector<32x128xbf16>, vector<8x128xf32> -> vector<8x128xf32>
    %23 = arith.addf %20, %22 : vector<8x128xf32>
    %24 = arith.negf %23 : vector<8x128xf32>
    %25 = math.exp %24 : vector<8x128xf32>
    %cst_14 = arith.constant 1.000000e+00 : f32
    %26 = vector.broadcast %cst_14 : f32 to vector<8x128xf32>
    %27 = arith.addf %26, %25 : vector<8x128xf32>
    %28 = arith.divf %26, %27 : vector<8x128xf32>
    %cst_15 = arith.constant 2.000000e+00 : f32
    %29 = vector.broadcast %cst_15 : f32 to vector<8x128xf32>
    %30 = arith.mulf %29, %28 : vector<8x128xf32>
    %cst_16 = arith.constant 1.000000e+00 : f32
    %31 = vector.broadcast %cst_16 : f32 to vector<8x128xf32>
    %32 = arith.subf %30, %31 : vector<8x128xf32>
    %33 = arith.select %13, %32, %28 : vector<8x128xi1>, vector<8x128xf32>
    %34 = vector.extract_strided_slice %33 {offsets = [0, 0], sizes = [8, 32], strides = [1, 1]} : vector<8x128xf32> to vector<8x32xf32>
    %35 = vector.extract_strided_slice %33 {offsets = [0, 32], sizes = [8, 32], strides = [1, 1]} : vector<8x128xf32> to vector<8x32xf32>
    %36 = vector.extract_strided_slice %33 {offsets = [0, 64], sizes = [8, 32], strides = [1, 1]} : vector<8x128xf32> to vector<8x32xf32>
    %37 = vector.extract_strided_slice %33 {offsets = [0, 96], sizes = [8, 32], strides = [1, 1]} : vector<8x128xf32> to vector<8x32xf32>
    %38 = arith.mulf %35, %16 : vector<8x32xf32>
    %39 = arith.mulf %34, %36 : vector<8x32xf32>
    %40 = arith.addf %38, %39 : vector<8x32xf32>
    %41 = math.tanh %40 : vector<8x32xf32>
    %42 = arith.mulf %37, %41 : vector<8x32xf32>
    %c1_i32 = arith.constant 1 : i32
    %c8_i32_17 = arith.constant 8 : i32
    %43 = arith.muli %c1_i32, %c8_i32_17 : i32
    %44 = tpu.assume_multiple %43, 8 : i32
    %45 = arith.index_cast %44 : i32 to index
    %c0_18 = arith.constant 0 : index
    %46 = vector.load %arg6[%45, %c0_18] : memref<64x128xf32, #tpu.memory_space<vmem>>, vector<8x128xf32>
    %47 = arith.truncf %42 : vector<8x32xf32> to vector<8x32xbf16>
    %cst_19 = arith.constant dense<0.000000e+00> : vector<8x128xf32>
    %48 = tpu.matmul %47, %14, %cst_19 {dimension_numbers = #tpu.dot_dimension_numbers<[1], [0], [0], [1], [0, 0, 1, 1], [], []>} : vector<8x32xbf16>, vector<32x128xbf16>, vector<8x128xf32> -> vector<8x128xf32>
    %49 = arith.addf %46, %48 : vector<8x128xf32>
    %50 = arith.negf %49 : vector<8x128xf32>
    %51 = math.exp %50 : vector<8x128xf32>
    %cst_20 = arith.constant 1.000000e+00 : f32
    %52 = vector.broadcast %cst_20 : f32 to vector<8x128xf32>
    %53 = arith.addf %52, %51 : vector<8x128xf32>
    %54 = arith.divf %52, %53 : vector<8x128xf32>
    %cst_21 = arith.constant 2.000000e+00 : f32
    %55 = vector.broadcast %cst_21 : f32 to vector<8x128xf32>
    %56 = arith.mulf %55, %54 : vector<8x128xf32>
    %cst_22 = arith.constant 1.000000e+00 : f32
    %57 = vector.broadcast %cst_22 : f32 to vector<8x128xf32>
    %58 = arith.subf %56, %57 : vector<8x128xf32>
    %59 = arith.select %13, %58, %54 : vector<8x128xi1>, vector<8x128xf32>
    %60 = vector.extract_strided_slice %59 {offsets = [0, 0], sizes = [8, 32], strides = [1, 1]} : vector<8x128xf32> to vector<8x32xf32>
    %61 = vector.extract_strided_slice %59 {offsets = [0, 32], sizes = [8, 32], strides = [1, 1]} : vector<8x128xf32> to vector<8x32xf32>
    %62 = vector.extract_strided_slice %59 {offsets = [0, 64], sizes = [8, 32], strides = [1, 1]} : vector<8x128xf32> to vector<8x32xf32>
    %63 = vector.extract_strided_slice %59 {offsets = [0, 96], sizes = [8, 32], strides = [1, 1]} : vector<8x128xf32> to vector<8x32xf32>
    %64 = arith.mulf %61, %40 : vector<8x32xf32>
    %65 = arith.mulf %60, %62 : vector<8x32xf32>
    %66 = arith.addf %64, %65 : vector<8x32xf32>
    %67 = math.tanh %66 : vector<8x32xf32>
    %68 = arith.mulf %63, %67 : vector<8x32xf32>
    %c2_i32 = arith.constant 2 : i32
    %c8_i32_23 = arith.constant 8 : i32
    %69 = arith.muli %c2_i32, %c8_i32_23 : i32
    %70 = tpu.assume_multiple %69, 8 : i32
    %71 = arith.index_cast %70 : i32 to index
    %c0_24 = arith.constant 0 : index
    %72 = vector.load %arg6[%71, %c0_24] : memref<64x128xf32, #tpu.memory_space<vmem>>, vector<8x128xf32>
    %73 = arith.truncf %68 : vector<8x32xf32> to vector<8x32xbf16>
    %cst_25 = arith.constant dense<0.000000e+00> : vector<8x128xf32>
    %74 = tpu.matmul %73, %14, %cst_25 {dimension_numbers = #tpu.dot_dimension_numbers<[1], [0], [0], [1], [0, 0, 1, 1], [], []>} : vector<8x32xbf16>, vector<32x128xbf16>, vector<8x128xf32> -> vector<8x128xf32>
    %75 = arith.addf %72, %74 : vector<8x128xf32>
    %76 = arith.negf %75 : vector<8x128xf32>
    %77 = math.exp %76 : vector<8x128xf32>
    %cst_26 = arith.constant 1.000000e+00 : f32
    %78 = vector.broadcast %cst_26 : f32 to vector<8x128xf32>
    %79 = arith.addf %78, %77 : vector<8x128xf32>
    %80 = arith.divf %78, %79 : vector<8x128xf32>
    %cst_27 = arith.constant 2.000000e+00 : f32
    %81 = vector.broadcast %cst_27 : f32 to vector<8x128xf32>
    %82 = arith.mulf %81, %80 : vector<8x128xf32>
    %cst_28 = arith.constant 1.000000e+00 : f32
    %83 = vector.broadcast %cst_28 : f32 to vector<8x128xf32>
    %84 = arith.subf %82, %83 : vector<8x128xf32>
    %85 = arith.select %13, %84, %80 : vector<8x128xi1>, vector<8x128xf32>
    %86 = vector.extract_strided_slice %85 {offsets = [0, 0], sizes = [8, 32], strides = [1, 1]} : vector<8x128xf32> to vector<8x32xf32>
    %87 = vector.extract_strided_slice %85 {offsets = [0, 32], sizes = [8, 32], strides = [1, 1]} : vector<8x128xf32> to vector<8x32xf32>
    %88 = vector.extract_strided_slice %85 {offsets = [0, 64], sizes = [8, 32], strides = [1, 1]} : vector<8x128xf32> to vector<8x32xf32>
    %89 = vector.extract_strided_slice %85 {offsets = [0, 96], sizes = [8, 32], strides = [1, 1]} : vector<8x128xf32> to vector<8x32xf32>
    %90 = arith.mulf %87, %66 : vector<8x32xf32>
    %91 = arith.mulf %86, %88 : vector<8x32xf32>
    %92 = arith.addf %90, %91 : vector<8x32xf32>
    %93 = math.tanh %92 : vector<8x32xf32>
    %94 = arith.mulf %89, %93 : vector<8x32xf32>
    %c3_i32 = arith.constant 3 : i32
    %c8_i32_29 = arith.constant 8 : i32
    %95 = arith.muli %c3_i32, %c8_i32_29 : i32
    %96 = tpu.assume_multiple %95, 8 : i32
    %97 = arith.index_cast %96 : i32 to index
    %c0_30 = arith.constant 0 : index
    %98 = vector.load %arg6[%97, %c0_30] : memref<64x128xf32, #tpu.memory_space<vmem>>, vector<8x128xf32>
    %99 = arith.truncf %94 : vector<8x32xf32> to vector<8x32xbf16>
    %cst_31 = arith.constant dense<0.000000e+00> : vector<8x128xf32>
    %100 = tpu.matmul %99, %14, %cst_31 {dimension_numbers = #tpu.dot_dimension_numbers<[1], [0], [0], [1], [0, 0, 1, 1], [], []>} : vector<8x32xbf16>, vector<32x128xbf16>, vector<8x128xf32> -> vector<8x128xf32>
    %101 = arith.addf %98, %100 : vector<8x128xf32>
    %102 = arith.negf %101 : vector<8x128xf32>
    %103 = math.exp %102 : vector<8x128xf32>
    %cst_32 = arith.constant 1.000000e+00 : f32
    %104 = vector.broadcast %cst_32 : f32 to vector<8x128xf32>
    %105 = arith.addf %104, %103 : vector<8x128xf32>
    %106 = arith.divf %104, %105 : vector<8x128xf32>
    %cst_33 = arith.constant 2.000000e+00 : f32
    %107 = vector.broadcast %cst_33 : f32 to vector<8x128xf32>
    %108 = arith.mulf %107, %106 : vector<8x128xf32>
    %cst_34 = arith.constant 1.000000e+00 : f32
    %109 = vector.broadcast %cst_34 : f32 to vector<8x128xf32>
    %110 = arith.subf %108, %109 : vector<8x128xf32>
    %111 = arith.select %13, %110, %106 : vector<8x128xi1>, vector<8x128xf32>
    %112 = vector.extract_strided_slice %111 {offsets = [0, 0], sizes = [8, 32], strides = [1, 1]} : vector<8x128xf32> to vector<8x32xf32>
    %113 = vector.extract_strided_slice %111 {offsets = [0, 32], sizes = [8, 32], strides = [1, 1]} : vector<8x128xf32> to vector<8x32xf32>
    %114 = vector.extract_strided_slice %111 {offsets = [0, 64], sizes = [8, 32], strides = [1, 1]} : vector<8x128xf32> to vector<8x32xf32>
    %115 = vector.extract_strided_slice %111 {offsets = [0, 96], sizes = [8, 32], strides = [1, 1]} : vector<8x128xf32> to vector<8x32xf32>
    %116 = arith.mulf %113, %92 : vector<8x32xf32>
    %117 = arith.mulf %112, %114 : vector<8x32xf32>
    %118 = arith.addf %116, %117 : vector<8x32xf32>
    %119 = math.tanh %118 : vector<8x32xf32>
    %120 = arith.mulf %115, %119 : vector<8x32xf32>
    %c4_i32 = arith.constant 4 : i32
    %c8_i32_35 = arith.constant 8 : i32
    %121 = arith.muli %c4_i32, %c8_i32_35 : i32
    %122 = tpu.assume_multiple %121, 8 : i32
    %123 = arith.index_cast %122 : i32 to index
    %c0_36 = arith.constant 0 : index
    %124 = vector.load %arg6[%123, %c0_36] : memref<64x128xf32, #tpu.memory_space<vmem>>, vector<8x128xf32>
    %125 = arith.truncf %120 : vector<8x32xf32> to vector<8x32xbf16>
    %cst_37 = arith.constant dense<0.000000e+00> : vector<8x128xf32>
    %126 = tpu.matmul %125, %14, %cst_37 {dimension_numbers = #tpu.dot_dimension_numbers<[1], [0], [0], [1], [0, 0, 1, 1], [], []>} : vector<8x32xbf16>, vector<32x128xbf16>, vector<8x128xf32> -> vector<8x128xf32>
    %127 = arith.addf %124, %126 : vector<8x128xf32>
    %128 = arith.negf %127 : vector<8x128xf32>
    %129 = math.exp %128 : vector<8x128xf32>
    %cst_38 = arith.constant 1.000000e+00 : f32
    %130 = vector.broadcast %cst_38 : f32 to vector<8x128xf32>
    %131 = arith.addf %130, %129 : vector<8x128xf32>
    %132 = arith.divf %130, %131 : vector<8x128xf32>
    %cst_39 = arith.constant 2.000000e+00 : f32
    %133 = vector.broadcast %cst_39 : f32 to vector<8x128xf32>
    %134 = arith.mulf %133, %132 : vector<8x128xf32>
    %cst_40 = arith.constant 1.000000e+00 : f32
    %135 = vector.broadcast %cst_40 : f32 to vector<8x128xf32>
    %136 = arith.subf %134, %135 : vector<8x128xf32>
    %137 = arith.select %13, %136, %132 : vector<8x128xi1>, vector<8x128xf32>
    %138 = vector.extract_strided_slice %137 {offsets = [0, 0], sizes = [8, 32], strides = [1, 1]} : vector<8x128xf32> to vector<8x32xf32>
    %139 = vector.extract_strided_slice %137 {offsets = [0, 32], sizes = [8, 32], strides = [1, 1]} : vector<8x128xf32> to vector<8x32xf32>
    %140 = vector.extract_strided_slice %137 {offsets = [0, 64], sizes = [8, 32], strides = [1, 1]} : vector<8x128xf32> to vector<8x32xf32>
    %141 = vector.extract_strided_slice %137 {offsets = [0, 96], sizes = [8, 32], strides = [1, 1]} : vector<8x128xf32> to vector<8x32xf32>
    %142 = arith.mulf %139, %118 : vector<8x32xf32>
    %143 = arith.mulf %138, %140 : vector<8x32xf32>
    %144 = arith.addf %142, %143 : vector<8x32xf32>
    %145 = math.tanh %144 : vector<8x32xf32>
    %146 = arith.mulf %141, %145 : vector<8x32xf32>
    %c5_i32 = arith.constant 5 : i32
    %c8_i32_41 = arith.constant 8 : i32
    %147 = arith.muli %c5_i32, %c8_i32_41 : i32
    %148 = tpu.assume_multiple %147, 8 : i32
    %149 = arith.index_cast %148 : i32 to index
    %c0_42 = arith.constant 0 : index
    %150 = vector.load %arg6[%149, %c0_42] : memref<64x128xf32, #tpu.memory_space<vmem>>, vector<8x128xf32>
    %151 = arith.truncf %146 : vector<8x32xf32> to vector<8x32xbf16>
    %cst_43 = arith.constant dense<0.000000e+00> : vector<8x128xf32>
    %152 = tpu.matmul %151, %14, %cst_43 {dimension_numbers = #tpu.dot_dimension_numbers<[1], [0], [0], [1], [0, 0, 1, 1], [], []>} : vector<8x32xbf16>, vector<32x128xbf16>, vector<8x128xf32> -> vector<8x128xf32>
    %153 = arith.addf %150, %152 : vector<8x128xf32>
    %154 = arith.negf %153 : vector<8x128xf32>
    %155 = math.exp %154 : vector<8x128xf32>
    %cst_44 = arith.constant 1.000000e+00 : f32
    %156 = vector.broadcast %cst_44 : f32 to vector<8x128xf32>
    %157 = arith.addf %156, %155 : vector<8x128xf32>
    %158 = arith.divf %156, %157 : vector<8x128xf32>
    %cst_45 = arith.constant 2.000000e+00 : f32
    %159 = vector.broadcast %cst_45 : f32 to vector<8x128xf32>
    %160 = arith.mulf %159, %158 : vector<8x128xf32>
    %cst_46 = arith.constant 1.000000e+00 : f32
    %161 = vector.broadcast %cst_46 : f32 to vector<8x128xf32>
    %162 = arith.subf %160, %161 : vector<8x128xf32>
    %163 = arith.select %13, %162, %158 : vector<8x128xi1>, vector<8x128xf32>
    %164 = vector.extract_strided_slice %163 {offsets = [0, 0], sizes = [8, 32], strides = [1, 1]} : vector<8x128xf32> to vector<8x32xf32>
    %165 = vector.extract_strided_slice %163 {offsets = [0, 32], sizes = [8, 32], strides = [1, 1]} : vector<8x128xf32> to vector<8x32xf32>
    %166 = vector.extract_strided_slice %163 {offsets = [0, 64], sizes = [8, 32], strides = [1, 1]} : vector<8x128xf32> to vector<8x32xf32>
    %167 = vector.extract_strided_slice %163 {offsets = [0, 96], sizes = [8, 32], strides = [1, 1]} : vector<8x128xf32> to vector<8x32xf32>
    %168 = arith.mulf %165, %144 : vector<8x32xf32>
    %169 = arith.mulf %164, %166 : vector<8x32xf32>
    %170 = arith.addf %168, %169 : vector<8x32xf32>
    %171 = math.tanh %170 : vector<8x32xf32>
    %172 = arith.mulf %167, %171 : vector<8x32xf32>
    %c6_i32 = arith.constant 6 : i32
    %c8_i32_47 = arith.constant 8 : i32
    %173 = arith.muli %c6_i32, %c8_i32_47 : i32
    %174 = tpu.assume_multiple %173, 8 : i32
    %175 = arith.index_cast %174 : i32 to index
    %c0_48 = arith.constant 0 : index
    %176 = vector.load %arg6[%175, %c0_48] : memref<64x128xf32, #tpu.memory_space<vmem>>, vector<8x128xf32>
    %177 = arith.truncf %172 : vector<8x32xf32> to vector<8x32xbf16>
    %cst_49 = arith.constant dense<0.000000e+00> : vector<8x128xf32>
    %178 = tpu.matmul %177, %14, %cst_49 {dimension_numbers = #tpu.dot_dimension_numbers<[1], [0], [0], [1], [0, 0, 1, 1], [], []>} : vector<8x32xbf16>, vector<32x128xbf16>, vector<8x128xf32> -> vector<8x128xf32>
    %179 = arith.addf %176, %178 : vector<8x128xf32>
    %180 = arith.negf %179 : vector<8x128xf32>
    %181 = math.exp %180 : vector<8x128xf32>
    %cst_50 = arith.constant 1.000000e+00 : f32
    %182 = vector.broadcast %cst_50 : f32 to vector<8x128xf32>
    %183 = arith.addf %182, %181 : vector<8x128xf32>
    %184 = arith.divf %182, %183 : vector<8x128xf32>
    %cst_51 = arith.constant 2.000000e+00 : f32
    %185 = vector.broadcast %cst_51 : f32 to vector<8x128xf32>
    %186 = arith.mulf %185, %184 : vector<8x128xf32>
    %cst_52 = arith.constant 1.000000e+00 : f32
    %187 = vector.broadcast %cst_52 : f32 to vector<8x128xf32>
    %188 = arith.subf %186, %187 : vector<8x128xf32>
    %189 = arith.select %13, %188, %184 : vector<8x128xi1>, vector<8x128xf32>
    %190 = vector.extract_strided_slice %189 {offsets = [0, 0], sizes = [8, 32], strides = [1, 1]} : vector<8x128xf32> to vector<8x32xf32>
    %191 = vector.extract_strided_slice %189 {offsets = [0, 32], sizes = [8, 32], strides = [1, 1]} : vector<8x128xf32> to vector<8x32xf32>
    %192 = vector.extract_strided_slice %189 {offsets = [0, 64], sizes = [8, 32], strides = [1, 1]} : vector<8x128xf32> to vector<8x32xf32>
    %193 = vector.extract_strided_slice %189 {offsets = [0, 96], sizes = [8, 32], strides = [1, 1]} : vector<8x128xf32> to vector<8x32xf32>
    %194 = arith.mulf %191, %170 : vector<8x32xf32>
    %195 = arith.mulf %190, %192 : vector<8x32xf32>
    %196 = arith.addf %194, %195 : vector<8x32xf32>
    %197 = math.tanh %196 : vector<8x32xf32>
    %198 = arith.mulf %193, %197 : vector<8x32xf32>
    %c7_i32 = arith.constant 7 : i32
    %c8_i32_53 = arith.constant 8 : i32
    %199 = arith.muli %c7_i32, %c8_i32_53 : i32
    %200 = tpu.assume_multiple %199, 8 : i32
    %201 = arith.index_cast %200 : i32 to index
    %c0_54 = arith.constant 0 : index
    %202 = vector.load %arg6[%201, %c0_54] : memref<64x128xf32, #tpu.memory_space<vmem>>, vector<8x128xf32>
    %203 = arith.truncf %198 : vector<8x32xf32> to vector<8x32xbf16>
    %cst_55 = arith.constant dense<0.000000e+00> : vector<8x128xf32>
    %204 = tpu.matmul %203, %14, %cst_55 {dimension_numbers = #tpu.dot_dimension_numbers<[1], [0], [0], [1], [0, 0, 1, 1], [], []>} : vector<8x32xbf16>, vector<32x128xbf16>, vector<8x128xf32> -> vector<8x128xf32>
    %205 = arith.addf %202, %204 : vector<8x128xf32>
    %206 = arith.negf %205 : vector<8x128xf32>
    %207 = math.exp %206 : vector<8x128xf32>
    %cst_56 = arith.constant 1.000000e+00 : f32
    %208 = vector.broadcast %cst_56 : f32 to vector<8x128xf32>
    %209 = arith.addf %208, %207 : vector<8x128xf32>
    %210 = arith.divf %208, %209 : vector<8x128xf32>
    %cst_57 = arith.constant 2.000000e+00 : f32
    %211 = vector.broadcast %cst_57 : f32 to vector<8x128xf32>
    %212 = arith.mulf %211, %210 : vector<8x128xf32>
    %cst_58 = arith.constant 1.000000e+00 : f32
    %213 = vector.broadcast %cst_58 : f32 to vector<8x128xf32>
    %214 = arith.subf %212, %213 : vector<8x128xf32>
    %215 = arith.select %13, %214, %210 : vector<8x128xi1>, vector<8x128xf32>
    %216 = vector.extract_strided_slice %215 {offsets = [0, 0], sizes = [8, 32], strides = [1, 1]} : vector<8x128xf32> to vector<8x32xf32>
    %217 = vector.extract_strided_slice %215 {offsets = [0, 32], sizes = [8, 32], strides = [1, 1]} : vector<8x128xf32> to vector<8x32xf32>
    %218 = vector.extract_strided_slice %215 {offsets = [0, 64], sizes = [8, 32], strides = [1, 1]} : vector<8x128xf32> to vector<8x32xf32>
    %219 = vector.extract_strided_slice %215 {offsets = [0, 96], sizes = [8, 32], strides = [1, 1]} : vector<8x128xf32> to vector<8x32xf32>
    %220 = arith.mulf %217, %196 : vector<8x32xf32>
    %221 = arith.mulf %216, %218 : vector<8x32xf32>
    %222 = arith.addf %220, %221 : vector<8x32xf32>
    %223 = math.tanh %222 : vector<8x32xf32>
    %224 = arith.mulf %219, %223 : vector<8x32xf32>
    %c8_i32_59 = arith.constant 8 : i32
    %c0_60 = arith.constant 0 : index
    %c0_61 = arith.constant 0 : index
    %225 = vector.load %arg5[%c0_60, %c0_61] : memref<8x32xf32, #tpu.memory_space<vmem>>, vector<8x32xf32>
    tpu.vector_store %arg5[%c0_60, %c0_61], %224 {strides = array<i32>} : memref<8x32xf32, #tpu.memory_space<vmem>>, vector<8x32xf32>,
    return
  }
  func.func @transform_0(%arg0: i32) -> (i32, i32, i32) {
    %c0_i32 = arith.constant 0 : i32
    %c0_i32_0 = arith.constant 0 : i32
    %c0_i32_1 = arith.constant 0 : i32
    return %arg0, %c0_i32, %c0_i32_0 : i32, i32, i32
  }
  func.func @transform_1(%arg0: i32) -> (i32, i32) {
    %c0_i32 = arith.constant 0 : i32
    %c0_i32_0 = arith.constant 0 : i32
    %c0_i32_1 = arith.constant 0 : i32
    return %c0_i32, %c0_i32_0 : i32, i32
  }
  func.func @transform_2(%arg0: i32) -> (i32, i32) {
    %c0_i32 = arith.constant 0 : i32
    %c0_i32_0 = arith.constant 0 : i32
    %c0_i32_1 = arith.constant 0 : i32
    return %c0_i32, %c0_i32_0 : i32, i32
  }
  func.func @transform_3(%arg0: i32) -> (i32, i32) {
    %c0_i32 = arith.constant 0 : i32
    %c0_i32_0 = arith.constant 0 : i32
    %c0_i32_1 = arith.constant 0 : i32
    return %c0_i32, %c0_i32_0 : i32, i32
  }
  func.func @transform_4(%arg0: i32) -> (i32, i32) {
    %c0_i32 = arith.constant 0 : i32
    %c0_i32_0 = arith.constant 0 : i32
    return %arg0, %c0_i32 : i32, i32
  }
}

</mosaic_0001>

<bundles_post_ra>
// kernel: lstm_model_forward.2
= control target key start
LH: loop header
LB: loop body
LE: loop exit
PB: predicated region body
PF: predicated region fallthrough
CT: control target
= control target key end

     0   :  { %v1051_v1 = vmov 0.0   ;;  %vm72_vm0 = vcmask 64512   ;;  %vm1052_vm1 = vmmov 0   ;;  %v1053_v6 = vmov 0   ;;  %s1055_s25 = smov 32   ;;  %s1262_s0 = inlined_call_operand.vmem [shape: f32[8,128], index: 0, kind: input, shape index: {}]   ;;  %s1263_s1 = inlined_call_operand.vmem [shape: bf16[32,128], index: 1, kind: input, shape index: {}]   ;;  %s1264_s2 = inlined_call_operand.vmem [shape: f32[1,128], index: 2, kind: input, shape index: {}]   ;;  %s1265_s3 = inlined_call_operand.vmem [shape: f32[1,8,8,8], index: 3, kind: input, shape index: {}]   ;;  %s1266_s4 = inlined_call_operand.vmem [shape: f32[8,32], index: 4, kind: output, shape index: {}]  }
   0x1   :  { %v1084_v0 = vld [vmem:[%s1263_s1] sm:$0xff]   ;;  %932 = vmatprep.subr.bf16.mxu1 %v1051_v1  ;;  %v844_v4 = vld [vmem:[%s1265_s3 + $0x8] sm:$0xff]  ;;  %936 = vmatprep.mubr.msk.bf16.mxu1 %vm1052_vm1, %v1051_v1  ;;  %v210_v19 = vlaneseq  ;;  %vm232_vm5 = vcmask 261120   ;;  %v845_v54 = vld [vmem:[%s1265_s3 + $0x10] sm:$0xff] }
   0x2   :  { %v64_v2 = vld [vmem:[%s1262_s0] sm:$0xff]  ;;  %933 = vmatpush3.bf16.msra.mxu1 %v1084_v0  ;;  %v1100_v5 = vld [vmem:[%s1263_s1 + $0x8] sm:$0xff]   ;;  %v846_v55 = vld [vmem:[%s1265_s3 + $0x18] sm:$0xff] }
   0x3   :  { %v17_v3 = vld [vmem:[%s1265_s3] sm:$0xff]  ;;  %918 = vmatprep.subr.mxu0 %v64_v2  ;;  %934 = vmatprep.subr.bf16.mxu1 %v1051_v1  ;;  %v211_v20 = vand.u32 127, %v210_v19  ;;  %v848_v57 = vld [vmem:[%s1265_s3 + $0x28] sm:$0xff]  ;;  %v849_v58 = vld [vmem:[%s1265_s3 + $0x30] sm:$0xff] }
   0x4   :  { %919 = vmatpush3.msra.mxu0 %v64_v2  ;;  %920 = vmatprep.mubr.msk.f32.mxu0 %vm72_vm0, %v17_v3  ;;  %v1123_v7 = vld [vmem:[%s1264_s2] ss:$0 sm:$0xff]  ;;  %s1054_s2 = smov 64   ;;  %v850_v59 = vld [vmem:[%s1265_s3 + $0x38] sm:$0xff] }
   0x5   :  { %921 = vmatmul.mubr.msk.f32.vlgmr.msra.gmra.mrb[0].mxu0 %vm72_vm0, %v844_v4  ;;  %948 = vmatprep.subr.bf16.mxu0 %v1051_v1  ;;  %vm212_vm2 = vcmp.ge.s32.totalorder %v211_v20, 64  ;;  %vm213_vm3 = vcmp.lt.s32.totalorder %v211_v20, 96  ;;  %v847_v56 = vld [vmem:[%s1265_s3 + $0x20] sm:$0xff] }
   0x6   :  { %935 = vmatpush3.bf16.msra.mxu1 %v1100_v5  ;;  %949 = vmatpush3.bf16.msra.mxu0 %v1084_v0  ;;  %vm1126_vm4 = vmand %vm212_vm2, %vm213_vm3 }
   0x7   :  { %940 = vmatprep.subr.bf16.mxu1 %v1051_v1  ;;  %950 = vmatprep.subr.bf16.mxu0 %v1051_v1 }
   0x8   :  { %923 = vmatprep.mubr.msk.f32.mxu0 %vm72_vm0, %v845_v54 }
   0x9   :  { %937 = vmatmul.mubr.bf16.vlgmr.msra.gmra.mrb[0].mxu1 %v1053_v6  ;;  %924 = vmatmul.mubr.msk.f32.gmra.mrb[2].mxu0 %vm72_vm0, %v846_v55 }
   0xa   :  { %941 = vmatpush3.bf16.msra.mxu1 %v1084_v0  ;;  %944 = vmatprep.mubr.msk.bf16.mxu1 %vm1052_vm1, %v1051_v1 }
   0xb   :  { %942 = vmatprep.subr.bf16.mxu1 %v1051_v1  ;;  %951 = vmatpush3.bf16.msra.mxu0 %v1100_v5 }
   0xc   :  { %964 = vmatprep.subr.bf16.mxu0 %v1051_v1  ;;  %926 = vmatprep.mubr.msk.f32.mxu0 %vm72_vm0, %v847_v56 }
   0xd   :  { %927 = vmatmul.mubr.msk.f32.gmra.mrb[4].mxu0 %vm72_vm0, %v848_v57 }
   0xe   :  { %943 = vmatpush3.bf16.msra.mxu1 %v1100_v5  ;;  %929 = vmatprep.mubr.msk.f32.mxu0 %vm72_vm0, %v849_v58 }
   0xf   :  { %956 = vmatprep.subr.bf16.mxu1 %v1051_v1 }
  0x11   :  { %930 = vmatmul.mubr.msk.f32.gmra.mrb[6].mxu0 %vm72_vm0, %v850_v59 }
  0x12   :  { %952 = vmatprep.mubr.msk.bf16.mxu0 %vm1052_vm1, %v1051_v1 }
  0xd8   :  { %v922_v8 = vpop.f32.mrb[0].mxu0 }
  0xd9   :  { %v163_v9 = vpop.f32.mrb[1].mxu0  ;;  %v169_v36 = vadd.f32 %v922_v8, %v1123_v7 }
  0xda   :  { %v164_v10 = vadd.f32 %v1123_v7, %v163_v9 }
  0xdc   :  { %v270_v11 = vpop.f32.mrb[0].mxu1  ;;  %v925_v2 = vpop.f32.mrb[2].mxu0 }
  0xdd   :  { %v276_v12 = vadd.f32 %v270_v11, %v164_v10  ;;  %v938_v13 = vpop.f32.mrb[1].mxu1  ;;  %v173_v3 = vpop.f32.mrb[3].mxu0 }
  0xde   :  { %v273_v14 = vpop.f32.mrb[2].mxu1  ;;  %v174_v11 = vadd.f32 %v1123_v7, %v173_v3 }
  0xdf   :  { %v862_v15 = vmul.f32 -1.442695, %v276_v12  ;;  %v939_v16 = vpop.f32.mrb[3].mxu1 }
  0xe0   :  { %v1176_v4 = vpop.f32.mrb[4].mxu0 }
  0xe1   :  { %1003 = vpow2.f32 %v862_v15  ;;  %v1178_v6 = vpop.f32.mrb[5].mxu0 }
  0xe2   :  { %v184_v58 = vadd.f32 %v1123_v7, %v1178_v6 }
  0xe4   :  { %v1180_v8 = vpop.f32.mrb[6].mxu0 }
  0xe5   :  { %v1182_v9 = vpop.f32.mrb[7].mxu0 }
  0xeb   :  { %v1004_v17 = vpop.eup %1003 }
  0xec   :  { %v280_v18 = vadd.f32 1.0, %v1004_v17 }
  0xee   :  { %1005 = vrcp.f32 %v280_v18 }
  0xf8   :  { %v1006_v21 = vpop.eup %1005 }
  0xf9   :  { %v283_v22 = vmul.f32 2.0, %v1006_v21 }
  0xfb   :  { %v863_v24 = vadd.f32 -1.0, %v283_v22 }
  0xfd   :  { %v285_v25 = vsel %vm1126_vm4, %v863_v24, %v1006_v21 }
  0xfe   :  { %288 = vrot.lane.b32.xlu0 %v285_v25, %s1054_s2  ;;  %v286_v28 = vmul.f32 0.0, %v285_v25 }
 0x170   :  { %v289_v26 = vpop.permute.xlu0 %288 }
 0x171   :  { %v291_v27 = vmul.f32 %v289_v26, %v285_v25 }
 0x173   :  { %293 = vrot.lane.b32.xlu0 %v291_v27, %s1055_s25 }
 0x1e5   :  { %v294_v29 = vpop.permute.xlu0 %293 }
 0x1e6   :  { %v296_v30 = vadd.f32 %v294_v29, %v286_v28 }
 0x1e8   :  { %1007 = vtanh.f32 %v296_v30 }
 0x1f2   :  { %v1008_v31 = vpop.eup %1007 }
 0x1f3   :  { %299 = vrot.lane.b32.xlu1 %v1008_v31, %s1054_s2 }
 0x265   :  { %v300_v32 = vpop.permute.xlu1 %299 }
 0x266   :  { %v302_v33 = vmul.f32 %v300_v32, %v285_v25 }
 0x268   :  { %v305_v34 = vpack.c.bf16 %v302_v33, %v302_v33 }
 0x26a   :  { %307 = vrot.lane.b32.xlu1 %v305_v34, %s1055_s25 }
 0x2dc   :  { %v308_v35 = vpop.permute.xlu1 %307 }
 0x2dd   :  { %945 = vmatmul.mubr.msk.bf16.vlgmr.msra.gmra.mrb[4].mxu1 %vm232_vm5, %v308_v35  ;;  %v179_v35 = vadd.f32 %v925_v2, %v1123_v7 }
 0x2de   :  { %957 = vmatpush3.bf16.msra.mxu1 %v1084_v0  ;;  %960 = vmatprep.mubr.msk.bf16.mxu1 %vm1052_vm1, %v1051_v1 }
 0x2df   :  { %958 = vmatprep.subr.bf16.mxu1 %v1051_v1 }
 0x2e2   :  { %959 = vmatpush3.bf16.msra.mxu1 %v1100_v5 }
 0x2e3   :  { %972 = vmatprep.subr.bf16.mxu1 %v1051_v1 }
 0x3b0   :  { %v346_v37 = vpop.f32.mrb[4].mxu1 }
 0x3b1   :  { %v352_v38 = vadd.f32 %v346_v37, %v169_v36  ;;  %v946_v39 = vpop.f32.mrb[5].mxu1 }
 0x3b2   :  { %v349_v40 = vpop.f32.mrb[6].mxu1 }
 0x3b3   :  { %v865_v41 = vmul.f32 -1.442695, %v352_v38  ;;  %v947_v42 = vpop.f32.mrb[7].mxu1 }
 0x3b5   :  { %1009 = vpow2.f32 %v865_v41 }
 0x3bf   :  { %v1010_v43 = vpop.eup %1009 }
 0x3c0   :  { %v356_v44 = vadd.f32 1.0, %v1010_v43 }
 0x3c2   :  { %1011 = vrcp.f32 %v356_v44 }
 0x3cc   :  { %v1012_v45 = vpop.eup %1011 }
 0x3cd   :  { %v359_v46 = vmul.f32 2.0, %v1012_v45 }
 0x3cf   :  { %v866_v47 = vadd.f32 -1.0, %v359_v46 }
 0x3d1   :  { %v361_v48 = vsel %vm1126_vm4, %v866_v47, %v1012_v45 }
 0x3d2   :  { %364 = vrot.lane.b32.xlu0 %v361_v48, %s1054_s2  ;;  %v362_v51 = vmul.f32 %v361_v48, %v296_v30 }
 0x444   :  { %v365_v49 = vpop.permute.xlu0 %364 }
 0x445   :  { %v367_v50 = vmul.f32 %v365_v49, %v361_v48 }
 0x447   :  { %369 = vrot.lane.b32.xlu1 %v367_v50, %s1055_s25 }
 0x4b9   :  { %v370_v52 = vpop.permute.xlu1 %369 }
 0x4ba   :  { %v372_v53 = vadd.f32 %v370_v52, %v362_v51 }
 0x4bc   :  { %1013 = vtanh.f32 %v372_v53 }
 0x4c6   :  { %v1014_v60 = vpop.eup %1013 }
 0x4c7   :  { %375 = vrot.lane.b32.xlu0 %v1014_v60, %s1054_s2 }
 0x539   :  { %v376_v61 = vpop.permute.xlu0 %375 }
 0x53a   :  { %v378_v62 = vmul.f32 %v376_v61, %v361_v48 }
 0x53c   :  { %v381_v63 = vpack.c.bf16 %v378_v62, %v378_v62 }
 0x53e   :  { %383 = vrot.lane.b32.xlu1 %v381_v63, %s1055_s25 }
 0x5b0   :  { %v384_v10 = vpop.permute.xlu1 %383 }
 0x5b1   :  { %953 = vmatmul.mubr.msk.bf16.vlgmr.msra.gmra.mrb[8].mxu0 %vm232_vm5, %v384_v10 }
 0x5b2   :  { %965 = vmatpush3.bf16.msra.mxu0 %v1084_v0  ;;  %968 = vmatprep.mubr.msk.bf16.mxu0 %vm1052_vm1, %v1051_v1 }
 0x5b3   :  { %966 = vmatprep.subr.bf16.mxu0 %v1051_v1 }
 0x5b6   :  { %967 = vmatpush3.bf16.msra.mxu0 %v1100_v5 }
 0x5b7   :  { %980 = vmatprep.subr.bf16.mxu0 %v1051_v1 }
 0x684   :  { %v422_v12 = vpop.f32.mrb[8].mxu0 }
 0x685   :  { %v428_v13 = vadd.f32 %v422_v12, %v174_v11  ;;  %v954_v14 = vpop.f32.mrb[9].mxu0 }
 0x686   :  { %v425_v15 = vpop.f32.mrb[10].mxu0 }
 0x687   :  { %v868_v16 = vmul.f32 -1.442695, %v428_v13  ;;  %v955_v17 = vpop.f32.mrb[11].mxu0 }
 0x689   :  { %1015 = vpow2.f32 %v868_v16 }
 0x693   :  { %v1016_v18 = vpop.eup %1015 }
 0x694   :  { %v432_v19 = vadd.f32 1.0, %v1016_v18 }
 0x696   :  { %1017 = vrcp.f32 %v432_v19 }
 0x6a0   :  { %v1018_v20 = vpop.eup %1017 }
 0x6a1   :  { %v435_v21 = vmul.f32 2.0, %v1018_v20 }
 0x6a3   :  { %v869_v22 = vadd.f32 -1.0, %v435_v21 }
 0x6a5   :  { %v437_v24 = vsel %vm1126_vm4, %v869_v22, %v1018_v20 }
 0x6a6   :  { %440 = vrot.lane.b32.xlu0 %v437_v24, %s1054_s2  ;;  %v438_v27 = vmul.f32 %v437_v24, %v372_v53 }
 0x718   :  { %v441_v25 = vpop.permute.xlu0 %440 }
 0x719   :  { %v443_v26 = vmul.f32 %v441_v25, %v437_v24  ;;  %v189_v25 = vadd.f32 %v1176_v4, %v1123_v7 }
 0x71b   :  { %445 = vrot.lane.b32.xlu1 %v443_v26, %s1055_s25 }
 0x78d   :  { %v446_v28 = vpop.permute.xlu1 %445 }
 0x78e   :  { %v448_v29 = vadd.f32 %v446_v28, %v438_v27 }
 0x790   :  { %1019 = vtanh.f32 %v448_v29 }
 0x79a   :  { %v1020_v30 = vpop.eup %1019 }
 0x79b   :  { %451 = vrot.lane.b32.xlu0 %v1020_v30, %s1054_s2 }
 0x80d   :  { %v452_v31 = vpop.permute.xlu0 %451 }
 0x80e   :  { %v454_v32 = vmul.f32 %v452_v31, %v437_v24 }
 0x810   :  { %v457_v33 = vpack.c.bf16 %v454_v32, %v454_v32 }
 0x812   :  { %459 = vrot.lane.b32.xlu1 %v457_v33, %s1055_s25 }
 0x884   :  { %v460_v34 = vpop.permute.xlu1 %459 }
 0x885   :  { %961 = vmatmul.mubr.msk.bf16.vlgmr.msra.gmra.mrb[8].mxu1 %vm232_vm5, %v460_v34 }
 0x886   :  { %973 = vmatpush3.bf16.msra.mxu1 %v1084_v0  ;;  %976 = vmatprep.mubr.msk.bf16.mxu1 %vm1052_vm1, %v1051_v1 }
 0x887   :  { %974 = vmatprep.subr.bf16.mxu1 %v1051_v1 }
 0x88a   :  { %975 = vmatpush3.bf16.msra.mxu1 %v1100_v5 }
 0x88b   :  { %988 = vmatprep.subr.bf16.mxu1 %v1051_v1 }
 0x958   :  { %v498_v36 = vpop.f32.mrb[8].mxu1 }
 0x959   :  { %v504_v37 = vadd.f32 %v498_v36, %v179_v35  ;;  %v962_v38 = vpop.f32.mrb[9].mxu1 }
 0x95a   :  { %v501_v39 = vpop.f32.mrb[10].mxu1 }
 0x95b   :  { %v871_v40 = vmul.f32 -1.442695, %v504_v37  ;;  %v963_v41 = vpop.f32.mrb[11].mxu1 }
 0x95d   :  { %1021 = vpow2.f32 %v871_v40 }
 0x967   :  { %v1022_v42 = vpop.eup %1021 }
 0x968   :  { %v508_v43 = vadd.f32 1.0, %v1022_v42 }
 0x96a   :  { %1023 = vrcp.f32 %v508_v43 }
 0x974   :  { %v1024_v44 = vpop.eup %1023 }
 0x975   :  { %v511_v45 = vmul.f32 2.0, %v1024_v44 }
 0x977   :  { %v872_v46 = vadd.f32 -1.0, %v511_v45 }
 0x979   :  { %v513_v47 = vsel %vm1126_vm4, %v872_v46, %v1024_v44  ;;  %v194_v44 = vadd.f32 %v1123_v7, %v1182_v9 }
 0x97a   :  { %516 = vrot.lane.b32.xlu0 %v513_v47, %s1054_s2  ;;  %v514_v50 = vmul.f32 %v513_v47, %v448_v29 }
 0x9ec   :  { %v517_v48 = vpop.permute.xlu0 %516 }
 0x9ed   :  { %v519_v49 = vmul.f32 %v517_v48, %v513_v47 }
 0x9ef   :  { %521 = vrot.lane.b32.xlu1 %v519_v49, %s1055_s25 }
 0xa61   :  { %v522_v51 = vpop.permute.xlu1 %521 }
 0xa62   :  { %v524_v52 = vadd.f32 %v522_v51, %v514_v50 }
 0xa64   :  { %1025 = vtanh.f32 %v524_v52 }
 0xa6e   :  { %v1026_v53 = vpop.eup %1025 }
 0xa6f   :  { %527 = vrot.lane.b32.xlu0 %v1026_v53, %s1054_s2 }
 0xae1   :  { %v528_v54 = vpop.permute.xlu0 %527 }
 0xae2   :  { %v530_v55 = vmul.f32 %v528_v54, %v513_v47 }
 0xae4   :  { %v533_v56 = vpack.c.bf16 %v530_v55, %v530_v55 }
 0xae6   :  { %535 = vrot.lane.b32.xlu1 %v533_v56, %s1055_s25 }
 0xb58   :  { %v536_v57 = vpop.permute.xlu1 %535 }
 0xb59   :  { %969 = vmatmul.mubr.msk.bf16.vlgmr.msra.gmra.mrb[12].mxu0 %vm232_vm5, %v536_v57 }
 0xb5a   :  { %981 = vmatpush3.bf16.msra.mxu0 %v1084_v0  ;;  %984 = vmatprep.mubr.msk.bf16.mxu0 %vm1052_vm1, %v1051_v1 }
 0xb5b   :  { %982 = vmatprep.subr.bf16.mxu0 %v1051_v1 }
 0xb5e   :  { %983 = vmatpush3.bf16.msra.mxu0 %v1100_v5 }
 0xc2c   :  { %v574_v59 = vpop.f32.mrb[12].mxu0 }
 0xc2d   :  { %v580_v60 = vadd.f32 %v574_v59, %v184_v58  ;;  %v970_v61 = vpop.f32.mrb[13].mxu0 }
 0xc2e   :  { %v577_v62 = vpop.f32.mrb[14].mxu0 }
 0xc2f   :  { %v874_v63 = vmul.f32 -1.442695, %v580_v60  ;;  %v971_v2 = vpop.f32.mrb[15].mxu0 }
 0xc31   :  { %1027 = vpow2.f32 %v874_v63 }
 0xc3b   :  { %v1028_v3 = vpop.eup %1027 }
 0xc3c   :  { %v584_v10 = vadd.f32 1.0, %v1028_v3 }
 0xc3e   :  { %1029 = vrcp.f32 %v584_v10  ;;  %v199_v10 = vadd.f32 %v1180_v8, %v1123_v7 }
 0xc48   :  { %v1030_v11 = vpop.eup %1029 }
 0xc49   :  { %v587_v12 = vmul.f32 2.0, %v1030_v11 }
 0xc4b   :  { %v875_v13 = vadd.f32 -1.0, %v587_v12 }
 0xc4d   :  { %v589_v14 = vsel %vm1126_vm4, %v875_v13, %v1030_v11 }
 0xc4e   :  { %592 = vrot.lane.b32.xlu0 %v589_v14, %s1054_s2  ;;  %v590_v16 = vmul.f32 %v589_v14, %v524_v52 }
 0xcc0   :  { %v593_v15 = vpop.permute.xlu0 %592 }
 0xcc1   :  { %v595_v6 = vmul.f32 %v593_v15, %v589_v14 }
 0xcc3   :  { %597 = vrot.lane.b32.xlu1 %v595_v6, %s1055_s25 }
 0xd35   :  { %v598_v17 = vpop.permute.xlu1 %597 }
 0xd36   :  { %v600_v18 = vadd.f32 %v598_v17, %v590_v16 }
 0xd38   :  { %1031 = vtanh.f32 %v600_v18 }
 0xd42   :  { %v1032_v19 = vpop.eup %1031 }
 0xd43   :  { %603 = vrot.lane.b32.xlu0 %v1032_v19, %s1054_s2 }
 0xdb5   :  { %v604_v20 = vpop.permute.xlu0 %603 }
 0xdb6   :  { %v606_v21 = vmul.f32 %v604_v20, %v589_v14 }
 0xdb8   :  { %v609_v22 = vpack.c.bf16 %v606_v21, %v606_v21 }
 0xdba   :  { %611 = vrot.lane.b32.xlu1 %v609_v22, %s1055_s25 }
 0xe2c   :  { %v612_v24 = vpop.permute.xlu1 %611 }
 0xe2d   :  { %977 = vmatmul.mubr.msk.bf16.vlgmr.msra.gmra.mrb[12].mxu1 %vm232_vm5, %v612_v24 }
 0xe2e   :  { %989 = vmatpush3.bf16.msra.mxu1 %v1084_v0  ;;  %992 = vmatprep.mubr.msk.bf16.mxu1 %vm1052_vm1, %v1051_v1 }
 0xe2f   :  { %990 = vmatprep.subr.bf16.mxu1 %v1051_v1 }
 0xe32   :  { %991 = vmatpush3.bf16.msra.mxu1 %v1100_v5 }
 0xf00   :  { %v650_v26 = vpop.f32.mrb[12].mxu1 }
 0xf01   :  { %v656_v27 = vadd.f32 %v650_v26, %v189_v25  ;;  %v978_v28 = vpop.f32.mrb[13].mxu1 }
 0xf02   :  { %v653_v29 = vpop.f32.mrb[14].mxu1 }
 0xf03   :  { %v877_v30 = vmul.f32 -1.442695, %v656_v27  ;;  %v979_v31 = vpop.f32.mrb[15].mxu1 }
 0xf05   :  { %1033 = vpow2.f32 %v877_v30 }
 0xf0f   :  { %v1034_v32 = vpop.eup %1033 }
 0xf10   :  { %v660_v33 = vadd.f32 1.0, %v1034_v32 }
 0xf12   :  { %1035 = vrcp.f32 %v660_v33 }
 0xf1c   :  { %v1036_v0 = vpop.eup %1035 }
 0xf1d   :  { %v663_v34 = vmul.f32 2.0, %v1036_v0 }
 0xf1f   :  { %v878_v35 = vadd.f32 -1.0, %v663_v34 }
 0xf21   :  { %v665_v1 = vsel %vm1126_vm4, %v878_v35, %v1036_v0 }
 0xf22   :  { %668 = vrot.lane.b32.xlu0 %v665_v1, %s1054_s2  ;;  %v666_v36 = vmul.f32 %v665_v1, %v600_v18 }
 0xf94   :  { %v669_v5 = vpop.permute.xlu0 %668 }
 0xf95   :  { %v671_v4 = vmul.f32 %v669_v5, %v665_v1 }
 0xf97   :  { %673 = vrot.lane.b32.xlu1 %v671_v4, %s1055_s25 }
0x1009   :  { %v674_v37 = vpop.permute.xlu1 %673 }
0x100a   :  { %v676_v38 = vadd.f32 %v674_v37, %v666_v36 }
0x100c   :  { %1037 = vtanh.f32 %v676_v38 }
0x1016   :  { %v1038_v39 = vpop.eup %1037 }
0x1017   :  { %679 = vrot.lane.b32.xlu0 %v1038_v39, %s1054_s2 }
0x1089   :  { %v680_v40 = vpop.permute.xlu0 %679 }
0x108a   :  { %v682_v41 = vmul.f32 %v680_v40, %v665_v1 }
0x108c   :  { %v685_v42 = vpack.c.bf16 %v682_v41, %v682_v41 }
0x108e   :  { %687 = vrot.lane.b32.xlu1 %v685_v42, %s1055_s25 }
0x1100   :  { %v688_v43 = vpop.permute.xlu1 %687 }
0x1101   :  { %985 = vmatmul.mubr.msk.bf16.vlgmr.msra.gmra.mrb[16].mxu0 %vm232_vm5, %v688_v43 }
0x11d4   :  { %v726_v45 = vpop.f32.mrb[16].mxu0 }
0x11d5   :  { %v732_v46 = vadd.f32 %v726_v45, %v194_v44  ;;  %v986_v47 = vpop.f32.mrb[17].mxu0 }
0x11d6   :  { %v729_v48 = vpop.f32.mrb[18].mxu0 }
0x11d7   :  { %v880_v49 = vmul.f32 -1.442695, %v732_v46  ;;  %v987_v50 = vpop.f32.mrb[19].mxu0 }
0x11d9   :  { %1039 = vpow2.f32 %v880_v49 }
0x11e3   :  { %v1040_v51 = vpop.eup %1039 }
0x11e4   :  { %v736_v52 = vadd.f32 1.0, %v1040_v51 }
0x11e6   :  { %1041 = vrcp.f32 %v736_v52 }
0x11f0   :  { %v1042_v53 = vpop.eup %1041 }
0x11f1   :  { %v739_v54 = vmul.f32 2.0, %v1042_v53 }
0x11f3   :  { %v881_v55 = vadd.f32 -1.0, %v739_v54 }
0x11f5   :  { %v741_v56 = vsel %vm1126_vm4, %v881_v55, %v1042_v53 }
0x11f6   :  { %744 = vrot.lane.b32.xlu0 %v741_v56, %s1054_s2  ;;  %v742_v58 = vmul.f32 %v741_v56, %v676_v38 }
0x1268   :  { %v745_v57 = vpop.permute.xlu0 %744 }
0x1269   :  { %v747_v9 = vmul.f32 %v745_v57, %v741_v56 }
0x126b   :  { %749 = vrot.lane.b32.xlu1 %v747_v9, %s1055_s25 }
0x12dd   :  { %v750_v59 = vpop.permute.xlu1 %749 }
0x12de   :  { %v752_v60 = vadd.f32 %v750_v59, %v742_v58 }
0x12e0   :  { %1043 = vtanh.f32 %v752_v60 }
0x12ea   :  { %v1044_v61 = vpop.eup %1043 }
0x12eb   :  { %755 = vrot.lane.b32.xlu0 %v1044_v61, %s1054_s2 }
0x135d   :  { %v756_v62 = vpop.permute.xlu0 %755 }
0x135e   :  { %v758_v63 = vmul.f32 %v756_v62, %v741_v56 }
0x1360   :  { %v761_v2 = vpack.c.bf16 %v758_v63, %v758_v63 }
0x1362   :  { %763 = vrot.lane.b32.xlu1 %v761_v2, %s1055_s25 }
0x13d4   :  { %v764_v3 = vpop.permute.xlu1 %763 }
0x13d5   :  { %993 = vmatmul.mubr.msk.bf16.vlgmr.msra.gmra.mrb[16].mxu1 %vm232_vm5, %v764_v3 }
0x14a8   :  { %v802_v11 = vpop.f32.mrb[16].mxu1 }
0x14a9   :  { %v808_v12 = vadd.f32 %v802_v11, %v199_v10  ;;  %v994_v13 = vpop.f32.mrb[17].mxu1 }
0x14aa   :  { %v805_v14 = vpop.f32.mrb[18].mxu1 }
0x14ab   :  { %v883_v15 = vmul.f32 -1.442695, %v808_v12  ;;  %v995_v6 = vpop.f32.mrb[19].mxu1 }
0x14ad   :  { %1045 = vpow2.f32 %v883_v15 }
0x14b7   :  { %v1046_v16 = vpop.eup %1045 }
0x14b8   :  { %v812_v17 = vadd.f32 1.0, %v1046_v16 }
0x14ba   :  { %1047 = vrcp.f32 %v812_v17 }
0x14c4   :  { %v1048_v18 = vpop.eup %1047 }
0x14c5   :  { %v815_v19 = vmul.f32 2.0, %v1048_v18 }
0x14c7   :  { %v884_v20 = vadd.f32 -1.0, %v815_v19 }
0x14c9   :  { %v817_v21 = vsel %vm1126_vm4, %v884_v20, %v1048_v18 }
0x14ca   :  { %820 = vrot.lane.b32.xlu0 %v817_v21, %s1054_s2  ;;  %v818_v8 = vmul.f32 %v817_v21, %v752_v60 }
0x153c   :  { %v821_v22 = vpop.permute.xlu0 %820 }
0x153d   :  { %v823_v7 = vmul.f32 %v821_v22, %v817_v21 }
0x153f   :  { %825 = vrot.lane.b32.xlu1 %v823_v7, %s1055_s25 }
0x15b1   :  { %v826_v24 = vpop.permute.xlu1 %825 }
0x15b2   :  { %v828_v25 = vadd.f32 %v826_v24, %v818_v8 }
0x15b4   :  { %1049 = vtanh.f32 %v828_v25 }
0x15be   :  { %v1050_v26 = vpop.eup %1049 }
0x15bf   :  { %831 = vrot.lane.b32.xlu0 %v1050_v26, %s1054_s2 }
0x1631   :  { %v832_v27 = vpop.permute.xlu0 %831 }
0x1632   :  { %v834_v28 = vmul.f32 %v832_v27, %v817_v21 }
0x1634   :  { %836 = vrot.lane.b32.xlu1 %v834_v28, %s1055_s25 }
0x16a6   :  { %v837_v29 = vpop.permute.xlu1 %836 }
0x16a7   :  { %839 = vst.msk [vmem:[%s1266_s4] sm:$0xff] %vm232_vm5, %v837_v29 }

</bundles_post_ra>
